<compile_context>
chip_gen: v7x
topology: tpu7x:2x2x1
jax: 0.10.0
libtpu: 0.0.40
codegen_flags: <defaults>
</compile_context>

<pallas_src>
import functools

import jax
import jax.numpy as jnp
from jax.experimental import pallas as pl
from jax.experimental.pallas import tpu as pltpu


def _attention_kernel(x_ref, p_ref, ws_ref, o_ref,
                      *, channel_attention, spatial_attention, st_attention):
    x = x_ref[...].astype(jnp.float32)                     # (Bb, C, T, HW)
    Bb, C, T, HW = x.shape

    def _softmax(v):
        # torch nn.Softmax() on a 2-D tensor -> softmax over the last dim.
        mx = jnp.max(v, axis=-1, keepdims=True)
        e = jnp.exp(v - mx)
        return e * pl.reciprocal(jnp.sum(e, axis=-1, keepdims=True), approx=True)

    def _small_linear(v, w, b):
        # VPU path for tiny (Bb,N)@(N,N)+b (N = 4 or 8): broadcast-mul + sum,
        # keeps the MXU push/pop latency off the critical path.
        return jnp.sum(v[:, :, None] * w[None, :, :], axis=1) + b

    # Packed small-parameter layout (rows of p_ref):
    #   [0:C, 0:C]            wc        (C, C)
    #   [C, 0:C]              bc        (C,)
    #   [C+1:C+1+T, 0:T]      wt        (T, T)
    #   [C+1+T, 0:T]          bt        (T,)
    #   [C+2+T, 0:HW]         bs        (HW,)

    # Shared partial reduction over T of the ORIGINAL x: m[b,c,hw]  (Bb, C, HW)
    m = jnp.mean(x, axis=2)

    # --- channel attention: a1 (Bb, C) ---
    if channel_attention:
        wc = p_ref[0:C, 0:C]
        bc = p_ref[C:C + 1, 0:C]
        a1_in = jnp.mean(m, axis=2)                                  # (Bb, C)
        a1 = _softmax(_small_linear(a1_in, wc, bc))                  # (Bb, C)
    else:
        a1 = jnp.ones((Bb, C), jnp.float32)

    # --- spatial attention: a2 (Bb, HW) ---
    if spatial_attention:
        bs = p_ref[C + 2 + T:C + 3 + T, 0:HW]                        # (1, HW) f32
        # mean over (T, C) of x*a1  ==  mean_c ( a1[c] * mean_t x )
        a2_in = jnp.mean(a1[:, :, None] * m, axis=1)                 # (Bb, HW)
        # bf16 MXU matmul with f32 accumulation; feeds a softmax.
        a2_lin = jnp.dot(a2_in.astype(ws_ref.dtype), ws_ref[...],
                         preferred_element_type=jnp.float32) + bs
        a2 = _softmax(a2_lin)                                        # (Bb, HW)
    else:
        a2 = jnp.ones((Bb, HW), jnp.float32)

    # y = x * a2 (lane broadcast); reused for the temporal reduction AND output.
    y = x * a2[:, None, None, :]                                     # (Bb, C, T, HW)

    # --- temporal attention: a3 (Bb, T) ---
    if st_attention:
        wt = p_ref[C + 1:C + 1 + T, 0:T]
        bt = p_ref[C + 1 + T:C + 2 + T, 0:T]
        # mean over (HW, C) of x*a1*a2 == (1/(C*HW)) * sum_c a1[c] * sum_hw a2*x
        s = jnp.sum(y, axis=3)                                       # (Bb, C, T)
        a3_in = jnp.sum(a1[:, :, None] * s, axis=1) * (1.0 / (C * HW))
        a3 = _softmax(_small_linear(a3_in, wt, bt))                  # (Bb, T)
    else:
        a3 = jnp.ones((Bb, T), jnp.float32)

    # Fused scale: out = x * a1 ⊗ a3 ⊗ a2 = y * (a1 ⊗ a3), written once.
    scale_ct = a1[:, :, None] * a3[:, None, :]                       # (Bb, C, T)
    o_ref[...] = (y * scale_ct[:, :, :, None]).astype(o_ref.dtype)


def _pack_small_params(wc, bc, wt, bt, bs, C, T, HW):
    """Pack the five tiny parameter tensors into one (8k, >=128)-tiled operand."""
    pcol = max(128, HW)
    rows = C + 1 + T + 1 + 1
    prow = ((rows + 7) // 8) * 8
    p = jnp.zeros((prow, pcol), jnp.float32)
    p = p.at[0:C, 0:C].set(wc.astype(jnp.float32))
    p = p.at[C, 0:C].set(bc.reshape(C).astype(jnp.float32))
    p = p.at[C + 1:C + 1 + T, 0:T].set(wt.astype(jnp.float32))
    p = p.at[C + 1 + T, 0:T].set(bt.reshape(T).astype(jnp.float32))
    p = p.at[C + 2 + T, 0:HW].set(bs.reshape(HW).astype(jnp.float32))
    return p


def _pick_batch_block(B, per_elem_bytes, *, vmem_budget=12 << 20, max_bblk=2):
    """Batch-block size: divides B, fits the VMEM budget (double-buffered in+out),
    keeps >= 2 grid steps whenever B >= 2 (v7x dual-TC), and stays small enough
    that the fully-materialized block stays under the ~64-vreg live-set budget."""
    vmem_cap = max(1, vmem_budget // (4 * per_elem_bytes))   # 2 bufs x (in + out)
    two_step_cap = max(1, B // 2) if B > 1 else 1
    cap = max(1, min(max_bblk, two_step_cap, vmem_cap, B))
    for bblk in range(cap, 0, -1):
        if B % bblk == 0:
            return bblk
    return 1


def attention_block(x, params, *, channel_attention=True, spatial_attention=True,
                    st_attention=True):
    """x: (B, C, T, H, W). params: (wcT, bc, wsT, bs, wtT, bt) with weights stored
    transposed as (in, out) so the projection is v @ w + b."""
    B, C, T, H, W = x.shape
    HW = H * W
    wc, bc, ws, bs, wt, bt = params

    xk = x.reshape(B, C, T, HW)
    p_small = _pack_small_params(wc, bc, wt, bt, bs, C, T, HW)
    ws_bf16 = ws.astype(jnp.bfloat16)            # bf16 weight: halves HBM + MXU passes
    prow, pcol = p_small.shape

    per_elem_bytes = C * T * HW * x.dtype.itemsize
    bblk = _pick_batch_block(B, per_elem_bytes)
    grid = (B // bblk,)

    kernel = functools.partial(
        _attention_kernel,
        channel_attention=channel_attention,
        spatial_attention=spatial_attention,
        st_attention=st_attention,
    )

    out = pl.pallas_call(
        kernel,
        out_shape=jax.ShapeDtypeStruct((B, C, T, HW), x.dtype),
        grid_spec=pltpu.PrefetchScalarGridSpec(
            num_scalar_prefetch=0,
            grid=grid,
            in_specs=[
                # x: batch-blocked, pipelined across grid steps.
                pl.BlockSpec((bblk, C, T, HW), lambda i: (i, 0, 0, 0)),
                # packed small params + bf16 spatial weight: constant block index
                # -> DMA'd once, resident across all steps.
                pl.BlockSpec((prow, pcol), lambda i: (0, 0)),
                pl.BlockSpec((HW, HW), lambda i: (0, 0)),
            ],
            out_specs=pl.BlockSpec((bblk, C, T, HW), lambda i: (i, 0, 0, 0)),
        ),
        # Output block i depends only on input block i (+ tiny weights), and it
        # has identical shape/dtype to x -> safe to alias; lets XLA reuse the
        # buffer when the caller donates x.
        input_output_aliases={0: 0},
        # Independent per-batch blocks: parallel axis shards grid steps across
        # both TensorCores on v7x; harmless on single-TC v5e/v6e.
        compiler_params=pltpu.CompilerParams(dimension_semantics=("parallel",)),
    )(xk, p_small, ws_bf16)
    return out.reshape(B, C, T, H, W)


def attention_block_reference(x, params):
    """Plain-JAX f32 mirror of the PyTorch forward (all attentions enabled)."""
    wc, bc, ws, bs, wt, bt = params
    B, C, T, H, W = x.shape
    # channel attention
    a1 = x.mean(axis=4).mean(axis=3).mean(axis=2)                       # (B, C)
    a1 = jax.nn.softmax(a1 @ wc + bc, axis=-1)
    x = x * a1[:, :, None, None, None]
    # spatial attention
    a2 = x.mean(axis=2).mean(axis=1).reshape(B, H * W)                  # (B, H*W)
    a2 = jax.nn.softmax(a2 @ ws + bs, axis=-1).reshape(B, H, W)
    x = x * a2[:, None, None, :, :]
    # temporal attention
    a3 = x.mean(axis=4).mean(axis=3).mean(axis=1)                       # (B, T)
    a3 = jax.nn.softmax(a3 @ wt + bt, axis=-1)
    x = x * a3[:, None, :, None, None]
    return x


if __name__ == "__main__":
    # Module config: in_channels=4, idx=0 (h=w=16), temporal_attention -> bt=8
    B, C, T, H, W = 2, 4, 8, 16, 16
    HW = H * W

    key = jax.random.PRNGKey(0)
    k = jax.random.split(key, 7)
    x = jax.random.normal(k[0], (B, C, T, H, W), jnp.float32)

    # Deterministic synthetic Linear parameters; weights stored transposed (in, out).
    wc = jax.random.normal(k[1], (C, C), jnp.float32) / jnp.sqrt(C)
    bc = jax.random.normal(k[2], (1, C), jnp.float32) * 0.1
    ws = jax.random.normal(k[3], (HW, HW), jnp.float32) / jnp.sqrt(HW)
    bs = jax.random.normal(k[4], (1, HW), jnp.float32) * 0.1
    wt = jax.random.normal(k[5], (T, T), jnp.float32) / jnp.sqrt(T)
    bt = jax.random.normal(k[6], (1, T), jnp.float32) * 0.1
    params = (wc, bc, ws, bs, wt, bt)

    out = attention_block(x, params)
    out = jax.block_until_ready(out)

    ref = attention_block_reference(x, params)
    assert out.shape == (B, C, T, H, W)
    # Relaxed tolerance: the spatial projection runs the weight in bf16 on the
    # MXU and the softmax denominators use the EUP approximate reciprocal; both
    # error sources compound but stay well under 1% relative (everything else
    # is exact f32, and the error is multiplicative so rtol dominates).
    assert jnp.allclose(out, ref, rtol=1e-2, atol=1e-6), "mismatch vs reference"

    print("KERNEL_OK")
</pallas_src>

<mosaic_0001>
module attributes {stable_mosaic.version = 11 : i64} {
  func.func @_attention_kernel(%arg0: i32, %arg1: memref<1x4x8x256xf32, #tpu.memory_space<vmem>>, %arg2: memref<16x256xf32, #tpu.memory_space<vmem>>, %arg3: memref<256x256xbf16, #tpu.memory_space<vmem>>, %arg4: memref<1x4x8x256xf32, #tpu.memory_space<vmem>>) attributes {dimension_semantics = [#tpu.dimension_semantics<parallel>], iteration_bounds = array<i64: 2>, scalar_prefetch = 0 : i64, scratch_operands = 0 : i64, tpu.core_type = #tpu.core_type<tc>, window_params = [{transform_indices = @transform_0, window_bounds = array<i64: 1, 4, 8, 256>}, {pipeline_mode = #tpu.pipeline_mode<synchronous>, transform_indices = @transform_1, window_bounds = array<i64: 16, 256>}, {pipeline_mode = #tpu.pipeline_mode<synchronous>, transform_indices = @transform_2, window_bounds = array<i64: 256, 256>}, {transform_indices = @transform_3, window_bounds = array<i64: 1, 4, 8, 256>}]} {
    %c0 = arith.constant 0 : index
    %c0_0 = arith.constant 0 : index
    %c0_1 = arith.constant 0 : index
    %c0_2 = arith.constant 0 : index
    %0 = vector.load %arg1[%c0, %c0_0, %c0_1, %c0_2] : memref<1x4x8x256xf32, #tpu.memory_space<vmem>>, vector<1x4x8x256xf32>
    %cst = arith.constant dense<0.000000e+00> : vector<1x4x256xf32>
    %1 = vector.multi_reduction <add>, %0, %cst [2] : vector<1x4x8x256xf32> to vector<1x4x256xf32>
    %cst_3 = arith.constant 8.000000e+00 : f32
    %2 = vector.broadcast %cst_3 : f32 to vector<1x4x256xf32>
    %3 = arith.divf %1, %2 : vector<1x4x256xf32>
    %c0_4 = arith.constant 0 : index
    %c0_5 = arith.constant 0 : index
    %4 = vector.load %arg2[%c0_4, %c0_5] : memref<16x256xf32, #tpu.memory_space<vmem>>, vector<4x4xf32>
    %c4 = arith.constant 4 : index
    %c0_6 = arith.constant 0 : index
    %5 = vector.load %arg2[%c4, %c0_6] : memref<16x256xf32, #tpu.memory_space<vmem>>, vector<1x4xf32>
    %cst_7 = arith.constant dense<0.000000e+00> : vector<1x4xf32>
    %6 = vector.multi_reduction <add>, %3, %cst_7 [2] : vector<1x4x256xf32> to vector<1x4xf32>
    %cst_8 = arith.constant 2.560000e+02 : f32
    %7 = vector.broadcast %cst_8 : f32 to vector<1x4xf32>
    %8 = arith.divf %6, %7 : vector<1x4xf32>
    %9 = vector.shape_cast %8 : vector<1x4xf32> to vector<1x4x1xf32>
    %10 = vector.shape_cast %4 : vector<4x4xf32> to vector<1x4x4xf32>
    %11 = vector.broadcast %9 : vector<1x4x1xf32> to vector<1x4x4xf32>
    %12 = arith.mulf %11, %10 : vector<1x4x4xf32>
    %cst_9 = arith.constant dense<0.000000e+00> : vector<1x4xf32>
    %13 = vector.multi_reduction <add>, %12, %cst_9 [1] : vector<1x4x4xf32> to vector<1x4xf32>
    %14 = arith.addf %13, %5 : vector<1x4xf32>
    %cst_10 = arith.constant dense<0xFF800000> : vector<1xf32>
    %15 = vector.multi_reduction <maximumf>, %14, %cst_10 [1] : vector<1x4xf32> to vector<1xf32>
    %16 = vector.shape_cast %15 : vector<1xf32> to vector<1x1xf32>
    %17 = vector.broadcast %16 : vector<1x1xf32> to vector<1x4xf32>
    %18 = arith.subf %14, %17 : vector<1x4xf32>
    %19 = math.exp %18 : vector<1x4xf32>
    %cst_11 = arith.constant dense<0.000000e+00> : vector<1xf32>
    %20 = vector.multi_reduction <add>, %19, %cst_11 [1] : vector<1x4xf32> to vector<1xf32>
    %21 = vector.shape_cast %20 : vector<1xf32> to vector<1x1xf32>
    %22 = tpu.reciprocal %21 {approx = true} : vector<1x1xf32> -> vector<1x1xf32>
    %23 = vector.broadcast %22 : vector<1x1xf32> to vector<1x4xf32>
    %24 = arith.mulf %19, %23 : vector<1x4xf32>
    %c14 = arith.constant 14 : index
    %c0_12 = arith.constant 0 : index
    %25 = vector.load %arg2[%c14, %c0_12] : memref<16x256xf32, #tpu.memory_space<vmem>>, vector<1x256xf32>
    %26 = vector.shape_cast %24 : vector<1x4xf32> to vector<1x4x1xf32>
    %27 = vector.broadcast %26 : vector<1x4x1xf32> to vector<1x4x256xf32>
    %28 = arith.mulf %27, %3 : vector<1x4x256xf32>
    %cst_13 = arith.constant dense<0.000000e+00> : vector<1x256xf32>
    %29 = vector.multi_reduction <add>, %28, %cst_13 [1] : vector<1x4x256xf32> to vector<1x256xf32>
    %cst_14 = arith.constant 4.000000e+00 : f32
    %30 = vector.broadcast %cst_14 : f32 to vector<1x256xf32>
    %31 = arith.divf %29, %30 : vector<1x256xf32>
    %32 = arith.truncf %31 : vector<1x256xf32> to vector<1x256xbf16>
    %c0_15 = arith.constant 0 : index
    %c0_16 = arith.constant 0 : index
    %33 = vector.load %arg3[%c0_15, %c0_16] : memref<256x256xbf16, #tpu.memory_space<vmem>>, vector<256x256xbf16>
    %cst_17 = arith.constant dense<0.000000e+00> : vector<1x256xf32>
    %34 = tpu.matmul %32, %33, %cst_17 {dimension_numbers = #tpu.dot_dimension_numbers<[1], [0], [0], [1], [0, 0, 1, 1], [], []>} : vector<1x256xbf16>, vector<256x256xbf16>, vector<1x256xf32> -> vector<1x256xf32>
    %35 = arith.addf %34, %25 : vector<1x256xf32>
    %cst_18 = arith.constant dense<0xFF800000> : vector<1xf32>
    %36 = vector.multi_reduction <maximumf>, %35, %cst_18 [1] : vector<1x256xf32> to vector<1xf32>
    %37 = vector.shape_cast %36 : vector<1xf32> to vector<1x1xf32>
    %38 = vector.broadcast %37 : vector<1x1xf32> to vector<1x256xf32>
    %39 = arith.subf %35, %38 : vector<1x256xf32>
    %40 = math.exp %39 : vector<1x256xf32>
    %cst_19 = arith.constant dense<0.000000e+00> : vector<1xf32>
    %41 = vector.multi_reduction <add>, %40, %cst_19 [1] : vector<1x256xf32> to vector<1xf32>
    %42 = vector.shape_cast %41 : vector<1xf32> to vector<1x1xf32>
    %43 = tpu.reciprocal %42 {approx = true} : vector<1x1xf32> -> vector<1x1xf32>
    %44 = vector.broadcast %43 : vector<1x1xf32> to vector<1x256xf32>
    %45 = arith.mulf %40, %44 : vector<1x256xf32>
    %46 = vector.shape_cast %45 : vector<1x256xf32> to vector<1x1x1x256xf32>
    %47 = vector.broadcast %46 : vector<1x1x1x256xf32> to vector<1x4x8x256xf32>
    %48 = arith.mulf %0, %47 : vector<1x4x8x256xf32>
    %c5 = arith.constant 5 : index
    %c0_20 = arith.constant 0 : index
    %49 = vector.load %arg2[%c5, %c0_20] : memref<16x256xf32, #tpu.memory_space<vmem>>, vector<8x8xf32>
    %c13 = arith.constant 13 : index
    %c0_21 = arith.constant 0 : index
    %50 = vector.load %arg2[%c13, %c0_21] : memref<16x256xf32, #tpu.memory_space<vmem>>, vector<1x8xf32>
    %cst_22 = arith.constant dense<0.000000e+00> : vector<1x4x8xf32>
    %51 = vector.multi_reduction <add>, %48, %cst_22 [3] : vector<1x4x8x256xf32> to vector<1x4x8xf32>
    %52 = vector.shape_cast %24 : vector<1x4xf32> to vector<1x4x1xf32>
    %53 = vector.broadcast %52 : vector<1x4x1xf32> to vector<1x4x8xf32>
    %54 = arith.mulf %53, %51 : vector<1x4x8xf32>
    %cst_23 = arith.constant dense<0.000000e+00> : vector<1x8xf32>
    %55 = vector.multi_reduction <add>, %54, %cst_23 [1] : vector<1x4x8xf32> to vector<1x8xf32>
    %cst_24 = arith.constant 9.765625E-4 : f32
    %56 = vector.broadcast %cst_24 : f32 to vector<1x8xf32>
    %57 = arith.mulf %55, %56 : vector<1x8xf32>
    %58 = vector.shape_cast %57 : vector<1x8xf32> to vector<1x8x1xf32>
    %59 = vector.shape_cast %49 : vector<8x8xf32> to vector<1x8x8xf32>
    %60 = vector.broadcast %58 : vector<1x8x1xf32> to vector<1x8x8xf32>
    %61 = arith.mulf %60, %59 : vector<1x8x8xf32>
    %cst_25 = arith.constant dense<0.000000e+00> : vector<1x8xf32>
    %62 = vector.multi_reduction <add>, %61, %cst_25 [1] : vector<1x8x8xf32> to vector<1x8xf32>
    %63 = arith.addf %62, %50 : vector<1x8xf32>
    %cst_26 = arith.constant dense<0xFF800000> : vector<1xf32>
    %64 = vector.multi_reduction <maximumf>, %63, %cst_26 [1] : vector<1x8xf32> to vector<1xf32>
    %65 = vector.shape_cast %64 : vector<1xf32> to vector<1x1xf32>
    %66 = vector.broadcast %65 : vector<1x1xf32> to vector<1x8xf32>
    %67 = arith.subf %63, %66 : vector<1x8xf32>
    %68 = math.exp %67 : vector<1x8xf32>
    %cst_27 = arith.constant dense<0.000000e+00> : vector<1xf32>
    %69 = vector.multi_reduction <add>, %68, %cst_27 [1] : vector<1x8xf32> to vector<1xf32>
    %70 = vector.shape_cast %69 : vector<1xf32> to vector<1x1xf32>
    %71 = tpu.reciprocal %70 {approx = true} : vector<1x1xf32> -> vector<1x1xf32>
    %72 = vector.broadcast %71 : vector<1x1xf32> to vector<1x8xf32>
    %73 = arith.mulf %68, %72 : vector<1x8xf32>
    %74 = vector.shape_cast %24 : vector<1x4xf32> to vector<1x4x1xf32>
    %75 = vector.shape_cast %73 : vector<1x8xf32> to vector<1x1x8xf32>
    %76 = vector.broadcast %74 : vector<1x4x1xf32> to vector<1x4x8xf32>
    %77 = vector.broadcast %75 : vector<1x1x8xf32> to vector<1x4x8xf32>
    %78 = arith.mulf %76, %77 : vector<1x4x8xf32>
    %79 = vector.shape_cast %78 : vector<1x4x8xf32> to vector<1x4x8x1xf32>
    %80 = vector.broadcast %79 : vector<1x4x8x1xf32> to vector<1x4x8x256xf32>
    %81 = arith.mulf %48, %80 : vector<1x4x8x256xf32>
    %c0_28 = arith.constant 0 : index
    %c0_29 = arith.constant 0 : index
    %c0_30 = arith.constant 0 : index
    %c0_31 = arith.constant 0 : index
    %82 = vector.load %arg4[%c0_28, %c0_29, %c0_30, %c0_31] : memref<1x4x8x256xf32, #tpu.memory_space<vmem>>, vector<1x4x8x256xf32>
    tpu.vector_store %arg4[%c0_28, %c0_29, %c0_30, %c0_31], %81 {strides = array<i32>} : memref<1x4x8x256xf32, #tpu.memory_space<vmem>>, vector<1x4x8x256xf32>,
    return
  }
  func.func @transform_0(%arg0: i32) -> (i32, i32, i32, i32) {
    %c0_i32 = arith.constant 0 : i32
    %c0_i32_0 = arith.constant 0 : i32
    %c0_i32_1 = arith.constant 0 : i32
    %c0_i32_2 = arith.constant 0 : i32
    return %arg0, %c0_i32, %c0_i32_0, %c0_i32_1 : i32, i32, i32, i32
  }
  func.func @transform_1(%arg0: i32) -> (i32, i32) {
    %c0_i32 = arith.constant 0 : i32
    %c0_i32_0 = arith.constant 0 : i32
    %c0_i32_1 = arith.constant 0 : i32
    return %c0_i32, %c0_i32_0 : i32, i32
  }
  func.func @transform_2(%arg0: i32) -> (i32, i32) {
    %c0_i32 = arith.constant 0 : i32
    %c0_i32_0 = arith.constant 0 : i32
    %c0_i32_1 = arith.constant 0 : i32
    return %c0_i32, %c0_i32_0 : i32, i32
  }
  func.func @transform_3(%arg0: i32) -> (i32, i32, i32, i32) {
    %c0_i32 = arith.constant 0 : i32
    %c0_i32_0 = arith.constant 0 : i32
    %c0_i32_1 = arith.constant 0 : i32
    %c0_i32_2 = arith.constant 0 : i32
    return %arg0, %c0_i32, %c0_i32_0, %c0_i32_1 : i32, i32, i32, i32
  }
}

</mosaic_0001>

<bundles_post_ra>
// kernel: tpu_custom_call.1
= control target key start
LH: loop header
LB: loop body
LE: loop exit
PB: predicated region body
PF: predicated region fallthrough
CT: control target
= control target key end

     0   :  { %8 = vsyncpa [#allocation3], 0  ;;  %s1614_s0 = inlined_call_operand.hbm [shape: f32[2,4,8,256], index: 0, kind: input, shape index: {}, may-alias: {0,3}]   ;;  %s1615_s1 = inlined_call_operand.hbm [shape: f32[16,256], index: 1, kind: input, shape index: {}]   ;;  %s1616_s2 = inlined_call_operand.vmem [shape: bf16[256,256], index: 2, kind: input, shape index: {}]   ;;  %s1617_s3 = inlined_call_operand.hbm [shape: f32[2,4,8,256], index: 3, kind: output, shape index: {}, may-alias: {0,3}]  }
   0x1   :  { %10 = vsyncpa [#allocation3 + $0x1], 0 }
   0x2   :  { %11 = vsyncpa [#allocation6], 0 }
   0x3   :  { %12 = vsyncpa [#allocation4], 0 }
   0x4   :  { %14 = vsyncpa [#allocation4 + $0x1], 0  ;;  %s1180_s12 = smov 0   ;;  %s1182_s13 = smov 0  }
   0x5   :  { %s1184_s14 = smov 0   ;;  %s1186_s15 = smov 0  }
   0x6 LB: > { %s1201_s16 = sadd.s32 4294967295, %s1151_s15   ;;  %s850_s17 = sadd.s32 4294967294, %s1151_s15   ;;  %s1151_s15 = sphi %s1186_s15, %s1637_s15   ;;  %s1147_s14 = sphi %s1184_s14, %s1636_s14   ;;  %s1143_s13 = sphi %s1182_s13, %s1635_s13   ;;  %s1139_s12 = sphi %s1180_s12, %s1634_s12  }
   0x7   : > { %p40_p0 = scmp.ne.s32.totalorder %s1143_s13, %s1139_s12  ;;  %p1618_p1 = scmp.eq.s32.totalorder %s1201_s16, 0 }
   0x8   : > { %p112_p3 = scmp.eq.s32.totalorder %s850_s17, 1  ;;  %p851_p5 = scmp.ge.s32.totalorder %s1151_s15, 1 }
   0x9   : > { %p1210_p4 = por %p1618_p1, %p40_p0  ;;  %p119_p7 = scmp.lt.s32.totalorder %s1151_s15, 3 }
   0xa   : > { %p1215_p6 = por %p112_p3, %p40_p0  ;;  %s1153_s21 = smov [#allocation5]  }
   0xb   : > { %s1621_s18 = scalar_select %p1210_p4, 1, 0 }
   0xc   : > { %s1622_s19 = scalar_select %p1215_p6, 1, 0 }
   0xd   : > { %p1220_p8 = pnand %p851_p5, %p119_p7  ;;  %s131_s22 = sshll.u32 %s1153_s21, 4  ;;  %s1224_s22 = int_to_ptr.vmem [resolvable:$true] %s131_s22 }
   0xe   : > { %s1236_s24 = sadd.s32 1, %s1151_s15   ;;  %s27_s25 = sadd.s32 1, %s1147_s14 }
   0xf   : > { %s1623_s20 = scalar_select %p1220_p8, 1, 0 }
  0x10   : > { %p908_p9 = pneg %p1220_p8  ;;  %s24_s26 = ssub.s32 %s1151_s15, %s1236_s24 }
  0x11   : > { %s1023_s29 = scalar_lea.hbm %s1615_s1, 512 }
  0x12   : > { %p1231_p11 = pnand %p908_p9, %p1618_p1  ;;  %p1024_p12 = scmp.ne.s32.totalorder %s1615_s1, %s1023_s29 }
  0x13   : > { %p1030_p5 = scmp.lt.u32.totalorder %s1023_s29, %s1615_s1 }
  0x14   : > { %p1025_p13 = pneg %p1231_p11 }
  0x16   : > { %p1026_p0 = pnand %p1025_p13, %p1024_p12 }
  0x18   : > { %p1027_p3 = pneg %p1026_p0 }
  0x1a   : > { %p1032_p7 = pnand %p1030_p5, %p1027_p3 }
  0x1c   : > { %1035 = shalt.err (!%p1032_p7)
}
  0x1d   : > { %s1036_s7 = scalar_lea.vmem %s1224_s22, 512  ;;  %p1044_p2 = scmp.lt.s32.totalorder %s1224_s22, %s1224_s22 }
  0x1e   : > { %p1037_p9 = scmp.ne.s32.totalorder %s1224_s22, %s1036_s7  ;;  %p1045_p6 = scmp.lt.s32.totalorder %s1036_s7, %s1036_s7 }
  0x20   : > { %p1039_p10 = pnand %p1037_p9, %p1025_p13  ;;  %p1046_p4 = por %p1045_p6, %p1044_p2 }
  0x22   : > { %p1040_p1 = pneg %p1039_p10 }
  0x24   : > { %p1047_p8 = pnand %p1046_p4, %p1040_p1 }
  0x26   : > { %1050 = shalt.err (!%p1047_p8)
}
  0x27   : > { %s1154_s8 = smov 256   ;;  %s1155_s9 = smov 16  }
  0x28   : > { %911 = dma.hbm_to_vmem [thread:$0]  (!%p1231_p11), %s1615_s1, 512, %s1224_s22, [#allocation6], %s1154_s8, %s1154_s8, %s1155_s9  }
  0x29   : > { %p25_p1 = scmp.eq.s32.totalorder %s24_s26, 0  ;;  %p34_p2 = scmp.ne.s32.totalorder %s1147_s14, %s1143_s13 }
  0x2a   : > { %p35_p4 = scmp.eq.s32.totalorder %s1151_s15, 0  ;;  %p921_p6 = scmp.lt.s32.totalorder %s1151_s15, 2 }
  0x2b   : > { %s1270_s17 = scalar_select %p25_p1, %s1147_s14, %s27_s25  }
  0x2c   : > { %p36_p8 = por %p35_p4, %p34_p2  ;;  %p1625_p10 = scmp.eq.s32.totalorder %s1201_s16, 1 }
  0x2d   : > { %s148_s23 = sand.u32 1, %s1147_s14   ;;  %s898_s27 = sshll.u32 %s1151_s15, 10 }
  0x2e   : > { %p1274_p12 = por %p1625_p10, %p34_p2  ;;  %s854_s28 = sshll.u32 %s148_s23, 6 }
  0x2f   : > { %s1283_s4 = scalar_lea.hbm %s1614_s0, %s898_s27  ;;  %s152_s22 = scalar_lea.vmem [#allocation2], %s854_s28 }
  0x30   : > { %s159_s25 = sshll.u32 %s152_s22, 4  ;;  %p1285_p11 = pnand %p921_p6, %p36_p8  ;;  %s1289_s25 = int_to_ptr.vmem [resolvable:$true] %s159_s25 }
  0x31   : > { %s1291_s5 = scalar_lea.sflag [#allocation3], %s148_s23  ;;  %s1051_s6 = scalar_lea.hbm %s1283_s4, 1024 }
  0x32   : > { %p1052_p13 = scmp.ne.s32.totalorder %s1283_s4, %s1051_s6  ;;  %p1053_p0 = pneg %p1285_p11 }
  0x33   : > { %s1056_s11 = scalar_lea.hbm %s1614_s0, 2048  ;;  %p1057_p7 = scmp.lt.u32.totalorder %s1283_s4, %s1614_s0 }
  0x34   : > { %p1054_p3 = pnand %p1053_p0, %p1052_p13  ;;  %p1058_p9 = scmp.lt.u32.totalorder %s1056_s11, %s1051_s6 }
  0x35   : > { %p1060_p2 = scmp.lt.u32.totalorder %s1051_s6, %s1283_s4 }
  0x36   : > { %p1055_p5 = pneg %p1054_p3  ;;  %p1059_p1 = por %p1058_p9, %p1057_p7 }
  0x38   : > { %p1061_p4 = por %p1060_p2, %p1059_p1 }
  0x3a   : > { %p1062_p6 = pnand %p1061_p4, %p1055_p5 }
  0x3c   : > { %1065 = shalt.err (!%p1062_p6)
}
  0x3d   : > { %s1066_s23 = scalar_lea.vmem %s1289_s25, 1024  ;;  %s1156_s29 = smov [#allocation2]  }
  0x3e   : > { %p1067_p8 = scmp.ne.s32.totalorder %s1289_s25, %s1066_s23  ;;  %s1071_s30 = sshll.u32 %s1156_s29, 4  ;;  %s1072_s30 = int_to_ptr.vmem [resolvable:$false] %s1071_s30 }
  0x3f   : > { %s1073_s22 = scalar_lea.vmem %s1072_s30, 2048  ;;  %p1074_p3 = scmp.lt.s32.totalorder %s1289_s25, %s1072_s30 }
  0x40   : > { %p1069_p10 = pnand %p1067_p8, %p1053_p0  ;;  %p1075_p7 = scmp.lt.s32.totalorder %s1073_s22, %s1066_s23 }
  0x42   : > { %p1070_p13 = pneg %p1069_p10  ;;  %p1076_p9 = por %p1075_p7, %p1074_p3 }
  0x44   : > { %p1077_p1 = pnand %p1076_p9, %p1070_p13 }
  0x46   : > { %1080 = shalt.err (!%p1077_p1)
}
  0x47   : > { %915 = dma.hbm_to_vmem [thread:$0]  (!%p1285_p11), %s1283_s4, 1024, %s1289_s25, %s1291_s5, %s1154_s8, %s1154_s8, %s1155_s9  }
  0x48   : > { %p1628_p0 = scmp.ne.s32.totalorder %s1623_s20, 0 }
  0x49   : > { %s1325_s6 = sand.u32 (!%p1628_p0), 1, %s1143_s13   ;;  %p1629_p5 = scmp.ne.s32.totalorder (!%p1628_p0), %s1621_s18, 0 }
  0x4a   : > { %171 = sbr.rel (%p1628_p0) target bundleno = 2017 (0x7e1), region = 32  ;;  %s858_s7 = sshll.u32 (!%p1628_p0), %s1325_s6, 6 }
  0x4b   : > { %s174_s10 = scalar_lea.sflag (!%p1628_p0), [#allocation3], %s1325_s6  ;;  %s177_s26 = scalar_lea.vmem (!%p1628_p0), [#allocation2], %s858_s7 }
  0x51   : > { %1126 = dma.done.wait (%p1629_p5), %s174_s10, 1024  }
  0x52   : > { %1128 = vsyncadd (%p1629_p5), %s174_s10, 4294966272  ;;  %p1630_p11 = scmp.eq.s32.totalorder %s1201_s16, 0 }
  0x54   : > { %1130 = dma.done.wait (%p1630_p11), [#allocation6], 512   ;;  %p1631_p2 = pmov %p1630_p11 }
  0x55   : > { %v1339_v0 = vld [vmem:[%s177_s26] sm:$0xff]  ;;  %v1341_v1 = vld [vmem:[%s177_s26 + $0x8] sm:$0xff]  ;;  %v1343_v2 = vld [vmem:[%s177_s26 + $0x10] sm:$0xff]  ;;  %vm279_vm0 = vcmask 1041409   ;;  %vm281_vm1 = vcmask 1042434   ;;  %vm283_vm2 = vcmask 1043459  }
  0x56   : > { %1132 = vsyncadd (%p1631_p2), [#allocation6], 4294966784  ;;  %v1345_v3 = vld [vmem:[%s177_s26 + $0x18] sm:$0xff]  ;;  %v1347_v4 = vld [vmem:[%s177_s26 + $0x20] sm:$0xff]  ;;  %v212_v6 = vrot.slane %v1339_v0, 4  ;;  %v218_v7 = vrot.slane %v1341_v1, 4 }
  0x57   : > { %v1349_v5 = vld [vmem:[%s177_s26 + $0x28] sm:$0xff]  ;;  %v224_v8 = vrot.slane %v1343_v2, 4  ;;  %v1354_v9 = vld [vmem:[%s177_s26 + $0x30] sm:$0xff]  ;;  %v1356_v10 = vld [vmem:[%s177_s26 + $0x38] sm:$0xff]  ;;  %v230_v11 = vrot.slane %v1345_v3, 4  ;;  %v236_v12 = vrot.slane %v1347_v4, 4 }
  0x58   : > { %v242_v13 = vrot.slane %v1349_v5, 4  ;;  %v213_v14 = vadd.f32 %v212_v6, %v1339_v0  ;;  %v219_v15 = vadd.f32 %v218_v7, %v1341_v1  ;;  %v248_v17 = vrot.slane %v1354_v9, 4  ;;  %s203_s18 = scalar_lea.vmem [#allocation7], %s858_s7  ;;  %s899_s8 = sshll.u32 %s1201_s16, 10 }
  0x59   : > { %v225_v16 = vadd.f32 %v224_v8, %v1343_v2  ;;  %v231_v18 = vadd.f32 %v230_v11, %v1345_v3  ;;  %v237_v19 = vadd.f32 %v236_v12, %v1347_v4  ;;  %v254_v21 = vrot.slane %v1356_v10, 4  ;;  %s767_s20 = sshll.u32 %s203_s18, 4  ;;  %s1568_s4 = scalar_lea.hbm %s1617_s3, %s899_s8  ;;  %s1563_s20 = int_to_ptr.vmem [resolvable:$true] %s767_s20 }
  0x5a   : > { %v243_v20 = vadd.f32 %v242_v13, %v1349_v5  ;;  %v214_v22 = vrot.slane %v213_v14, 2  ;;  %v220_v23 = vrot.slane %v219_v15, 2  ;;  %v249_v25 = vadd.f32 %v248_v17, %v1354_v9  ;;  %v269_v17 = vld [vmem:[#allocation5] sm:$0xf]  ;;  %s754_s16 = scalar_lea.sflag [#allocation4], %s1325_s6  ;;  %s1081_s25 = scalar_lea.vmem %s1563_s20, 1024 }
  0x5b   : > { %v226_v24 = vrot.slane %v225_v16, 2  ;;  %v232_v26 = vrot.slane %v231_v18, 2  ;;  %v238_v27 = vrot.slane %v237_v19, 2  ;;  %v255_v29 = vadd.f32 %v254_v21, %v1356_v10  ;;  %p1082_p4 = scmp.ne.s32.totalorder %s1563_s20, %s1081_s25  ;;  %s1157_s5 = smov [#allocation7]  }
  0x5c   : > { %v244_v28 = vrot.slane %v243_v20, 2  ;;  %v215_v30 = vadd.f32 %v214_v22, %v213_v14  ;;  %v221_v31 = vadd.f32 %v220_v23, %v219_v15  ;;  %v250_v33 = vrot.slane %v249_v25, 2  ;;  %s1085_s11 = sshll.u32 %s1157_s5, 4  ;;  %s1086_s11 = int_to_ptr.vmem [resolvable:$false] %s1085_s11 }
  0x5d   : > { %v227_v32 = vadd.f32 %v226_v24, %v225_v16  ;;  %v233_v34 = vadd.f32 %v232_v26, %v231_v18  ;;  %v239_v35 = vadd.f32 %v238_v27, %v237_v19  ;;  %v256_v37 = vrot.slane %v255_v29, 2  ;;  %v270_v27 = vld [vmem:[#allocation5 + $0x4] ss:$0 sm:$0xff]  ;;  %p1083_p6 = pnand %p1082_p4, %p1274_p12  ;;  %s1087_s27 = scalar_lea.vmem %s1086_s11, 2048 }
  0x5e   : > { %v245_v36 = vadd.f32 %v244_v28, %v243_v20  ;;  %v216_v38 = vrot.slane %v215_v30, 1  ;;  %v222_v39 = vrot.slane %v221_v31, 1  ;;  %v251_v41 = vadd.f32 %v250_v33, %v249_v25  ;;  %p1088_p10 = scmp.lt.s32.totalorder %s1563_s20, %s1086_s11  ;;  %p1089_p13 = scmp.lt.s32.totalorder %s1087_s27, %s1081_s25 }
  0x5f   : > { %v228_v40 = vrot.slane %v227_v32, 1  ;;  %v234_v42 = vrot.slane %v233_v34, 1  ;;  %v240_v43 = vrot.slane %v239_v35, 1  ;;  %v257_v45 = vadd.f32 %v256_v37, %v255_v29  ;;  %v963_v37 = vld [vmem:[%s1616_s2] ss:$8 sps:$4 sm:$0xff]   ;;  %p1084_p8 = pneg %p1083_p6 }
  0x60   : > { %v246_v44 = vrot.slane %v245_v36, 1  ;;  %v217_v46 = vadd.f32 %v216_v38, %v215_v30  ;;  %v223_v47 = vadd.f32 %v222_v39, %v221_v31  ;;  %v252_v49 = vrot.slane %v251_v41, 1  ;;  %v964_v38 = vld [vmem:[%s1616_s2 + $0x14] ss:$8 sps:$4 sm:$0xff]   ;;  %v966_v39 = vld [vmem:[%s1616_s2 + $0x10] ss:$8 sps:$4 sm:$0xff]   ;;  %p1090_p3 = por %p1089_p13, %p1088_p10 }
  0x61   : > { %v229_v48 = vadd.f32 %v228_v40, %v227_v32  ;;  %v235_v50 = vadd.f32 %v234_v42, %v233_v34  ;;  %v241_v51 = vadd.f32 %v240_v43, %v239_v35  ;;  %v258_v53 = vrot.slane %v257_v45, 1  ;;  %v967_v40 = vld [vmem:[%s1616_s2 + $0x24] ss:$8 sps:$4 sm:$0xff]   ;;  %v970_v42 = vld [vmem:[%s1616_s2 + $0x34] ss:$8 sps:$4 sm:$0xff]  }
  0x62   : > { %v247_v52 = vadd.f32 %v246_v44, %v245_v36  ;;  %v253_v54 = vadd.f32 %v252_v49, %v251_v41  ;;  %v261_v55 = vmul.f32 0.125, %v217_v46  ;;  %v262_v56 = vmul.f32 0.125, %v223_v47  ;;  %v961_v36 = vld [vmem:[%s1616_s2 + $0x4] ss:$8 sps:$4 sm:$0xff]   ;;  %v969_v41 = vld [vmem:[%s1616_s2 + $0x20] ss:$8 sps:$4 sm:$0xff]   ;;  %p1091_p7 = pnand %p1090_p3, %p1084_p8 }
  0x63   : > { %v263_v57 = vmul.f32 0.125, %v229_v48  ;;  %v259_v58 = vadd.f32 %v258_v53, %v257_v45  ;;  %v264_v59 = vmul.f32 0.125, %v235_v50  ;;  %v265_v60 = vmul.f32 0.125, %v241_v51  ;;  %549 = vmatprep.subr.bf16.mxu0 %v961_v36  ;;  %v972_v43 = vld [vmem:[%s1616_s2 + $0x30] ss:$8 sps:$4 sm:$0xff]  }
  0x64   : > { %v266_v61 = vmul.f32 0.125, %v247_v52  ;;  %v267_v62 = vmul.f32 0.125, %v253_v54  ;;  %vm290_vm3 = vcmask 1043456   ;;  %vm299_vm4 = vcmask 27648   ;;  %550 = vmatpush1.bf16.msra.mxu0 %v963_v37  ;;  %v973_v44 = vld [vmem:[%s1616_s2 + $0x44] ss:$8 sps:$4 sm:$0xff]  }
  0x65   : > { %v280_v63 = vsel %vm279_vm0, %v263_v57, %v261_v55  ;;  %v268_v6 = vmul.f32 0.125, %v259_v58  ;;  %v285_v8 = vsel %vm279_vm0, %v264_v59, %v262_v56  ;;  %vm308_vm5 = vcmask 31744   ;;  %551 = vmatprep.subr.bf16.mxu0 %v964_v38  ;;  %v975_v45 = vld [vmem:[%s1616_s2 + $0x40] ss:$8 sps:$4 sm:$0xff]   ;;  %v976_v46 = vld [vmem:[%s1616_s2 + $0x54] ss:$8 sps:$4 sm:$0xff]  }
  0x66   : > { %v282_v7 = vsel %vm281_vm1, %v265_v60, %v280_v63  ;;  %v286_v12 = vsel %vm281_vm1, %v266_v61, %v285_v8  ;;  %v978_v47 = vld [vmem:[%s1616_s2 + $0x50] ss:$8 sps:$4 sm:$0xff]   ;;  %v979_v48 = vld [vmem:[%s1616_s2 + $0x64] ss:$8 sps:$4 sm:$0xff]   ;;  %v981_v49 = vld [vmem:[%s1616_s2 + $0x60] ss:$8 sps:$4 sm:$0xff]   ;;  %v539_v36 = vlaneseq }
  0x67   : > { %v1375_v11 = vsel %vm283_vm2, %v267_v62, %v282_v7  ;;  %v1379_v13 = vsel %vm283_vm2, %v268_v6, %v286_v12  ;;  %v982_v50 = vld [vmem:[%s1616_s2 + $0x74] ss:$8 sps:$4 sm:$0xff]   ;;  %v984_v51 = vld [vmem:[%s1616_s2 + $0x70] ss:$8 sps:$4 sm:$0xff]   ;;  %v985_v52 = vld [vmem:[%s1616_s2 + $0x84] ss:$8 sps:$4 sm:$0xff]  }
  0x68   : > { %v291_v14 = vsel %vm290_vm3, %v1375_v11, 0.0  ;;  %v292_v15 = vsel %vm290_vm3, %v1379_v13, 0.0  ;;  %552 = vmatpush1.bf16.msra.mxu0 %v966_v39  ;;  %v987_v53 = vld [vmem:[%s1616_s2 + $0x80] ss:$8 sps:$4 sm:$0xff]   ;;  %v988_v54 = vld [vmem:[%s1616_s2 + $0x94] ss:$8 sps:$4 sm:$0xff]  }
  0x69   : > { %v293_v16 = vadd.f32 %v292_v15, %v291_v14  ;;  %553 = vmatprep.subr.bf16.mxu0 %v967_v40  ;;  %v990_v55 = vld [vmem:[%s1616_s2 + $0x90] ss:$8 sps:$4 sm:$0xff]   ;;  %v991_v56 = vld [vmem:[%s1616_s2 + $0xa4] ss:$8 sps:$4 sm:$0xff]   ;;  %v993_v57 = vld [vmem:[%s1616_s2 + $0xa0] ss:$8 sps:$4 sm:$0xff]  }
  0x6a   : > { %v994_v58 = vld [vmem:[%s1616_s2 + $0xb4] ss:$8 sps:$4 sm:$0xff]   ;;  %v996_v60 = vld [vmem:[%s1616_s2 + $0xb0] ss:$8 sps:$4 sm:$0xff]   ;;  %v997_v61 = vld [vmem:[%s1616_s2 + $0xc4] ss:$8 sps:$4 sm:$0xff]  }
  0x6b   : > { %294 = vadd.xlane.f32.xlu0 %v293_v16  ;;  %v999_v62 = vld [vmem:[%s1616_s2 + $0xc0] ss:$8 sps:$4 sm:$0xff]   ;;  %v1000_v63 = vld [vmem:[%s1616_s2 + $0xd4] ss:$8 sps:$4 sm:$0xff]   ;;  %v1002_v6 = vld [vmem:[%s1616_s2 + $0xd0] ss:$8 sps:$4 sm:$0xff]  }
  0x6c   : > { %554 = vmatpush1.bf16.msra.mxu0 %v969_v41  ;;  %v1003_v7 = vld [vmem:[%s1616_s2 + $0xe4] ss:$8 sps:$4 sm:$0xff]   ;;  %v1005_v8 = vld [vmem:[%s1616_s2 + $0xe0] ss:$8 sps:$4 sm:$0xff]   ;;  %v1006_v14 = vld [vmem:[%s1616_s2 + $0xf4] ss:$8 sps:$4 sm:$0xff]  }
  0x6d   : > { %555 = vmatprep.subr.bf16.mxu0 %v970_v42  ;;  %v1008_v16 = vld [vmem:[%s1616_s2 + $0xf0] ss:$8 sps:$4 sm:$0xff]   ;;  %v1493_v37 = vshrl.u32 %v539_v36, 7  ;;  %v321_v39 = vld [vmem:[#allocation5 + $0x16] ss:$8 sm:$0x3] }
  0x6e   : > { %vm590_vm6 = vcmask 1040384   ;;  %vm668_vm7 = vcmask 60416   ;;  %vm682_vm8 = vcmask 1042432   ;;  %vm688_vm9 = vcmask 64512  }
  0x6f   : > { %v1496_v38 = vsub.s32 0, %v1493_v37  ;;  %v545_v40 = vsub.s32 1, %v1493_v37 }
  0x70   : > { %556 = vmatpush1.bf16.msra.mxu0 %v972_v43 }
  0x71   : > { %557 = vmatprep.subr.bf16.mxu0 %v973_v44  ;;  %v542_v41 = vrot.slane %v321_v39, %v1496_v38  ;;  %v546_v42 = vrot.slane %v321_v39, %v545_v40 }
  0x74   : > { %558 = vmatpush1.bf16.msra.mxu0 %v975_v45 }
  0x75   : > { %559 = vmatprep.subr.bf16.mxu0 %v976_v46 }
  0x78   : > { %560 = vmatpush1.bf16.msra.mxu0 %v978_v47 }
  0x79   : > { %561 = vmatprep.subr.bf16.mxu0 %v979_v48 }
  0x7c   : > { %562 = vmatpush1.bf16.msra.mxu0 %v981_v49 }
  0x7d   : > { %563 = vmatprep.subr.bf16.mxu0 %v982_v50 }
  0x80   : > { %564 = vmatpush1.bf16.msra.mxu0 %v984_v51 }
  0x81   : > { %565 = vmatprep.subr.bf16.mxu0 %v985_v52 }
  0x84   : > { %566 = vmatpush1.bf16.msra.mxu0 %v987_v53 }
  0x85   : > { %567 = vmatprep.subr.bf16.mxu0 %v988_v54 }
  0x88   : > { %568 = vmatpush1.bf16.msra.mxu0 %v990_v55 }
  0x89   : > { %569 = vmatprep.subr.bf16.mxu0 %v991_v56 }
  0x8c   : > { %570 = vmatpush1.bf16.msra.mxu0 %v993_v57 }
  0x8d   : > { %571 = vmatprep.subr.bf16.mxu0 %v994_v58 }
  0x90   : > { %572 = vmatpush1.bf16.msra.mxu0 %v996_v60 }
  0x91   : > { %573 = vmatprep.subr.bf16.mxu0 %v997_v61 }
  0x94   : > { %574 = vmatpush1.bf16.msra.mxu0 %v999_v62 }
  0x95   : > { %575 = vmatprep.subr.bf16.mxu0 %v1000_v63 }
  0x98   : > { %576 = vmatpush1.bf16.msra.mxu0 %v1002_v6 }
  0x99   : > { %577 = vmatprep.subr.bf16.mxu0 %v1003_v7 }
  0x9c   : > { %578 = vmatpush1.bf16.msra.mxu0 %v1005_v8 }
  0x9d   : > { %579 = vmatprep.subr.bf16.mxu0 %v1006_v14 }
  0xa0   : > { %580 = vmatpush1.bf16.msra.mxu0 %v1008_v16 }
  0xf8   : > { %v295_v18 = vpop.xlane.xlu0 %294 }
  0xf9   : > { %v297_v19 = vmul.f32 0.00390625, %v295_v18 }
  0xfb   : > { %v298_v20 = vmul.f32 %v297_v19, %v269_v17 }
  0xfd   : > { %v300_v21 = vsel %vm299_vm4, %v298_v20, 0.0 }
  0xfe   : > { %v301_v22 = vrot.slane %v300_v21, 4 }
 0x100   : > { %v302_v23 = vadd.f32 %v301_v22, %v300_v21 }
 0x102   : > { %v303_v24 = vrot.slane %v302_v23, 2 }
 0x104   : > { %v304_v25 = vadd.f32 %v303_v24, %v302_v23 }
 0x106   : > { %v305_v26 = vrot.slane %v304_v25, 1 }
 0x108   : > { %v306_v28 = vadd.f32 %v305_v26, %v304_v25 }
 0x10a   : > { %v307_v29 = vadd.f32 %v306_v28, %v270_v27 }
 0x10c   : > { %v309_v30 = vsel %vm308_vm5, %v307_v29, -inf }
 0x10d   : > { %310 = vmax.xlane.f32.xlu0 %v309_v30 }
 0x19a   : > { %v311_v31 = vpop.xlane.xlu0 %310 }
 0x19b   : > { %v312_v32 = vsub.f32 %v307_v29, %v311_v31 }
 0x19d   : > { %v313_v33 = vmul.f32 1.442695, %v312_v32 }
 0x19f   : > { %1009 = vpow2.f32 %v313_v33 }
 0x1a9   : > { %v1385_v34 = vpop.eup %1009 }
 0x1aa   : > { %v315_v35 = vsel %vm308_vm5, %v1385_v34, 0.0 }
 0x1ab   : > { %316 = vadd.xlane.f32.xlu1 %v315_v35 }
 0x238   : > { %v317_v59 = vpop.xlane.xlu1 %316 }
 0x239   : > { %1011 = vrcp.f32 %v317_v59 }
 0x243   : > { %v1012_v12 = vpop.eup %1011 }
 0x244   : > { %v319_v15 = vmul.f32 %v1012_v12, %v1385_v34 }
 0x246   : > { %323 = vbcast.lane.b32.xlu1 %v319_v15, 256 }
 0x2b8   : > { %v1485_v17 = vpop.permute.xlu1 %323 }
 0x2b9   : > { %v325_v18 = vmul.f32 %v1485_v17, %v1375_v11  ;;  %v326_v19 = vmul.f32 %v1485_v17, %v1379_v13 }
 0x2bb   : > { %v327_v20 = vsel %vm290_vm3, %v325_v18, 0.0  ;;  %v334_v21 = vsel %vm290_vm3, %v326_v19, 0.0 }
 0x2bc   : > { %v328_v22 = vrot.slane %v327_v20, 4  ;;  %v335_v23 = vrot.slane %v334_v21, 4 }
 0x2be   : > { %v329_v24 = vadd.f32 %v328_v22, %v327_v20  ;;  %v336_v25 = vadd.f32 %v335_v23, %v334_v21 }
 0x2c0   : > { %v337_v26 = vrot.slane %v336_v25, 2  ;;  %v330_v27 = vrot.slane %v329_v24, 2 }
 0x2c2   : > { %v338_v28 = vadd.f32 %v337_v26, %v336_v25  ;;  %v331_v29 = vadd.f32 %v330_v27, %v329_v24 }
 0x2c4   : > { %v339_v30 = vrot.slane %v338_v28, 1  ;;  %v332_v31 = vrot.slane %v331_v29, 1 }
 0x2c6   : > { %v340_v32 = vadd.f32 %v339_v30, %v338_v28  ;;  %v333_v33 = vadd.f32 %v332_v31, %v331_v29 }
 0x2c8   : > { %v343_v11 = vmul.f32 0.25, %v340_v32  ;;  %v342_v34 = vmul.f32 0.25, %v333_v33 }
 0x2ca   : > { %v345_v35 = vpack.c.bf16 %v343_v11, %v343_v11  ;;  %v344_v13 = vpack.c.bf16 %v342_v34, %v342_v34 }
 0x2cc   : > { %581 = vmatprep.mubr.bf16.mxu0 %v345_v35 }
 0x2cd   : > { %582 = vmatmul.mubr.bf16.vlgmr.msra.gmra.mrb[0].mxu0 %v344_v13 }
 0x3a0   : > { %v583_v43 = vpop.f32.mrb[0].mxu0 }
 0x3a1   : > { %v584_v44 = vadd.f32 %v583_v43, %v542_v41  ;;  %v585_v45 = vpop.f32.mrb[1].mxu0  ;;  %v627_v43 = vld [vmem:[#allocation5 + $0x10] sm:$0x1f] }
 0x3a2   : > { %v586_v46 = vadd.f32 %v585_v45, %v546_v42  ;;  %v587_v47 = vpop.f32.mrb[2].mxu0  ;;  %v626_v42 = vld [vmem:[#allocation5] sm:$0xe0]  ;;  %v684_v45 = vrot.slane %v627_v43, 5 }
 0x3a3   : > { %v588_v48 = vpop.f32.mrb[3].mxu0  ;;  %v591_v49 = vsel %vm590_vm6, %v584_v44, -inf }
 0x3a4   : > { %v592_v50 = vsel %vm590_vm6, %v586_v46, -inf }
 0x3a5   : > { %v593_v51 = vmax.f32 %v591_v49, %v592_v50 }
 0x3a7   : > { %594 = vmax.xlane.f32.xlu0 %v593_v51 }
 0x434   : > { %v595_v52 = vpop.xlane.xlu0 %594 }
 0x435   : > { %v596_v53 = vsub.f32 %v584_v44, %v595_v52  ;;  %v597_v54 = vsub.f32 %v586_v46, %v595_v52  ;;  %v683_v44 = vrot.slane %v626_v42, 5 }
 0x437   : > { %v598_v55 = vmul.f32 1.442695, %v596_v53  ;;  %v600_v56 = vmul.f32 1.442695, %v597_v54  ;;  %v685_v46 = vsel %vm682_vm8, %v683_v44, %v684_v45 }
 0x439   : > { %1013 = vpow2.f32 %v598_v55  ;;  %v628_v55 = vld [vmem:[#allocation5 + $0x15] ss:$0 sm:$0xff] }
 0x43a   : > { %1015 = vpow2.f32 %v600_v56 }
 0x443   : > { %v1014_v57 = vpop.eup %1013 }
 0x444   : > { %v1016_v58 = vpop.eup %1015  ;;  %v602_v59 = vsel %vm590_vm6, %v1014_v57, 0.0 }
 0x445   : > { %v603_v60 = vsel %vm590_vm6, %v1016_v58, 0.0 }
 0x446   : > { %v604_v61 = vadd.f32 %v603_v60, %v602_v59 }
 0x448   : > { %605 = vadd.xlane.f32.xlu0 %v604_v61 }
 0x4d5   : > { %v606_v62 = vpop.xlane.xlu0 %605 }
 0x4d6   : > { %1017 = vrcp.f32 %v606_v62 }
 0x4e0   : > { %v1018_v63 = vpop.eup %1017 }
 0x4e1   : > { %v608_v6 = vmul.f32 %v1018_v63, %v1014_v57  ;;  %v609_v7 = vmul.f32 %v1018_v63, %v1016_v58 }
 0x4e3   : > { %v613_v8 = vrot.slane %v608_v6, %v1496_v38  ;;  %v617_v12 = vrot.slane %v609_v7, %v1496_v38 }
 0x4e5   : > { %v1509_v14 = vmul.f32 %v613_v8, %v1347_v4  ;;  %v1512_v15 = vmul.f32 %v617_v12, %v1349_v5  ;;  %v1515_v16 = vmul.f32 %v613_v8, %v1339_v0  ;;  %v1518_v18 = vmul.f32 %v617_v12, %v1341_v1 }
 0x4e6   : > { %v1525_v21 = vmul.f32 %v613_v8, %v1343_v2  ;;  %v1528_v4 = vmul.f32 %v617_v12, %v1345_v3  ;;  %v1533_v1 = vmul.f32 %v613_v8, %v1354_v9  ;;  %v1536_v5 = vmul.f32 %v617_v12, %v1356_v10 }
 0x4e7   : > { %v635_v19 = vadd.f32 %v1512_v15, %v1509_v14  ;;  %v629_v20 = vadd.f32 %v1518_v18, %v1515_v16  ;;  %v646_v2 = vand.u32 127, %v539_v36  ;;  %v725_v12 = vsub.s32 2, %v1493_v37 }
 0x4e8   : > { %v632_v0 = vadd.f32 %v1528_v4, %v1525_v21  ;;  %v638_v22 = vadd.f32 %v1536_v5, %v1533_v1 }
 0x4e9   : > { %636 = vadd.xlane.f32.xlu1 %v635_v19  ;;  %630 = vadd.xlane.f32.xlu0 %v629_v20  ;;  %v649_v3 = vsub.s32 %v646_v2, %v1493_v37  ;;  %v732_v2 = vsub.s32 3, %v1493_v37 }
 0x4ed   : > { %633 = vadd.xlane.f32.xlu0 %v632_v0 }
 0x4f1   : > { %639 = vadd.xlane.f32.xlu0 %v638_v22 }
 0x576   : > { %v631_v23 = vpop.xlane.xlu0 %630  ;;  %v637_v25 = vpop.xlane.xlu1 %636 }
 0x577   : > { %v650_v26 = vrot.slane %v631_v23, %v649_v3  ;;  %v658_v9 = vrot.slane %v637_v25, %v649_v3 }
 0x57a   : > { %v634_v24 = vpop.xlane.xlu0 %633 }
 0x57b   : > { %v654_v27 = vrot.slane %v634_v24, %v649_v3 }
 0x57d   : > { %v663_v28 = vsel %vm279_vm0, %v654_v27, %v650_v26 }
 0x57e   : > { %v640_v29 = vpop.xlane.xlu0 %639  ;;  %v664_v10 = vsel %vm281_vm1, %v658_v9, %v663_v28 }
 0x57f   : > { %v662_v30 = vrot.slane %v640_v29, %v649_v3 }
 0x581   : > { %v665_v31 = vsel %vm283_vm2, %v662_v30, %v664_v10 }
 0x582   : > { %v667_v32 = vmul.f32 %v665_v31, %v1485_v17 }
 0x584   : > { %v669_v33 = vsel %vm668_vm7, %v667_v32, 0.0 }
 0x585   : > { %v670_v11 = vrot.slane %v669_v33, 4 }
 0x587   : > { %v671_v34 = vadd.f32 %v670_v11, %v669_v33 }
 0x589   : > { %v672_v35 = vrot.slane %v671_v34, 2 }
 0x58b   : > { %v673_v13 = vadd.f32 %v672_v35, %v671_v34 }
 0x58d   : > { %v674_v36 = vrot.slane %v673_v13, 1 }
 0x58f   : > { %v675_v39 = vadd.f32 %v674_v36, %v673_v13 }
 0x591   : > { %v676_v41 = vmul.f32 0.0009765625, %v675_v39 }
 0x593   : > { %678 = vbcast.lane.b32.xlu0 %v676_v41, 256 }
 0x605   : > { %v679_v47 = vpop.permute.xlu0 %678 }
 0x606   : > { %v687_v48 = vmul.f32 %v685_v46, %v679_v47 }
 0x608   : > { %v689_v49 = vsel %vm688_vm9, %v687_v48, 0.0 }
 0x609   : > { %v690_v50 = vrot.slane %v689_v49, 4 }
 0x60b   : > { %v691_v51 = vadd.f32 %v690_v50, %v689_v49 }
 0x60d   : > { %v692_v52 = vrot.slane %v691_v51, 2 }
 0x60f   : > { %v693_v53 = vadd.f32 %v692_v52, %v691_v51 }
 0x611   : > { %v694_v54 = vrot.slane %v693_v53, 1 }
 0x613   : > { %v695_v56 = vadd.f32 %v694_v54, %v693_v53 }
 0x615   : > { %v696_v57 = vadd.f32 %v695_v56, %v628_v55 }
 0x617   : > { %v697_v58 = vsel %vm688_vm9, %v696_v57, -inf }
 0x618   : > { %698 = vmax.xlane.f32.xlu0 %v697_v58 }
 0x6a5   : > { %v699_v59 = vpop.xlane.xlu0 %698 }
 0x6a6   : > { %v700_v60 = vsub.f32 %v696_v57, %v699_v59 }
 0x6a8   : > { %v701_v61 = vmul.f32 1.442695, %v700_v60 }
 0x6aa   : > { %1019 = vpow2.f32 %v701_v61 }
 0x6b4   : > { %v1020_v62 = vpop.eup %1019 }
 0x6b5   : > { %v703_v63 = vsel %vm688_vm9, %v1020_v62, 0.0 }
 0x6b6   : > { %704 = vadd.xlane.f32.xlu1 %v703_v63 }
 0x743   : > { %v705_v6 = vpop.xlane.xlu1 %704 }
 0x744   : > { %1021 = vrcp.f32 %v705_v6 }
 0x74e   : > { %v1022_v7 = vpop.eup %1021 }
 0x74f   : > { %v707_v8 = vmul.f32 %v1022_v7, %v1020_v62 }
 0x751   : > { %v708_v19 = vmul.f32 %v707_v8, %v1485_v17 }
 0x753   : > { %v726_v20 = vrot.slane %v708_v19, %v725_v12  ;;  %v712_v0 = vrot.slane %v708_v19, %v1496_v38  ;;  %v719_v22 = vrot.slane %v708_v19, %v545_v40  ;;  %v733_v23 = vrot.slane %v708_v19, %v732_v2 }
 0x755   : > { %728 = vbcast.lane.b32.xlu0 %v726_v20, 256  ;;  %714 = vbcast.lane.b32.xlu1 %v712_v0, 256 }
 0x759   : > { %721 = vbcast.lane.b32.xlu1 %v719_v22, 256 }
 0x75d   : > { %735 = vbcast.lane.b32.xlu1 %v733_v23, 256 }
 0x7c7   : > { %v729_v3 = vpop.permute.xlu0 %728  ;;  %v715_v24 = vpop.permute.xlu1 %714 }
 0x7c8   : > { %v741_v25 = vmul.f32 %v729_v3, %v1509_v14  ;;  %v742_v17 = vmul.f32 %v729_v3, %v1512_v15  ;;  %v737_v26 = vmul.f32 %v715_v24, %v1515_v16  ;;  %v738_v38 = vmul.f32 %v715_v24, %v1518_v18 }
 0x7ca   : > { %749 = vst [vmem:[%s203_s18 + $0x20] sm:$0xff] %v741_v25  ;;  %750 = vst [vmem:[%s203_s18 + $0x28] sm:$0xff] %v742_v17 }
 0x7cb   : > { %745 = vst [vmem:[%s203_s18] sm:$0xff] %v737_v26  ;;  %746 = vst [vmem:[%s203_s18 + $0x8] sm:$0xff] %v738_v38  ;;  %v722_v37 = vpop.permute.xlu1 %721 }
 0x7cc   : > { %v739_v40 = vmul.f32 %v722_v37, %v1525_v21  ;;  %v740_v14 = vmul.f32 %v722_v37, %v1528_v4 }
 0x7ce   : > { %747 = vst [vmem:[%s203_s18 + $0x10] sm:$0xff] %v739_v40  ;;  %748 = vst [vmem:[%s203_s18 + $0x18] sm:$0xff] %v740_v14 }
 0x7cf   : > { %v736_v15 = vpop.permute.xlu1 %735 }
 0x7d0   : > { %v743_v16 = vmul.f32 %v736_v15, %v1533_v1  ;;  %v744_v18 = vmul.f32 %v736_v15, %v1536_v5 }
 0x7d2   : > { %751 = vst [vmem:[%s203_s18 + $0x30] sm:$0xff] %v743_v16  ;;  %752 = vst [vmem:[%s203_s18 + $0x38] sm:$0xff] %v744_v18 }
 0x7d3   : > { %1094 = shalt.err (!%p1091_p7)
}
 0x7d4   : > { %s1095_s28 = scalar_lea.hbm %s1568_s4, 1024  ;;  %s1099_s30 = scalar_lea.hbm %s1617_s3, 2048 }
 0x7d5   : > { %p1096_p9 = scmp.ne.s32.totalorder %s1568_s4, %s1095_s28  ;;  %p1100_p5 = scmp.lt.u32.totalorder %s1568_s4, %s1617_s3 }
 0x7d6   : > { %p1101_p11 = scmp.lt.u32.totalorder %s1099_s30, %s1095_s28  ;;  %p1103_p4 = scmp.lt.u32.totalorder %s1095_s28, %s1568_s4 }
 0x7d7   : > { %p1097_p1 = pnand %p1096_p9, %p1274_p12 }
 0x7d8   : > { %p1102_p2 = por %p1101_p11, %p1100_p5 }
 0x7d9   : > { %p1098_p0 = pneg %p1097_p1 }
 0x7da   : > { %p1104_p6 = por %p1103_p4, %p1102_p2 }
 0x7dc   : > { %p1105_p8 = pnand %p1104_p6, %p1098_p0 }
 0x7de   : > { %1108 = shalt.err (!%p1105_p8)
}
 0x7df   : > { %s1158_s26 = smov 256   ;;  %s1159_s18 = smov 16  }
 0x7e0   : > { %906 = dma.vmem_to_hbm [thread:$0]  (%p1274_p12), %s1563_s20, 1024, %s1568_s4, %s754_s16, %s1158_s26, %s1158_s26, %s1159_s18  }
 0x7e1 PF: > { %s782_s8 = sand.u32 1, %s1139_s12   ;;  %p1632_p10 = scmp.ne.s32.totalorder %s1622_s19, 0 }
 0x7e2   : > { %p1633_p13 = scmp.ge.s32.totalorder %s1151_s15, 2  ;;  %s783_s7 = scalar_lea.sflag [#allocation4], %s782_s8 }
 0x7e4   : > { %p917_p3 = pnand %p1633_p13, %p1632_p10 }
 0x7e6   : > { %1134 = dma.done.wait (!%p917_p3), %s783_s7, 1024  }
 0x7e7   : > { %1136 = vsyncadd (!%p917_p3), %s783_s7, 4294966272  ;;  %p17_p7 = scmp.ge.s32.totalorder %s1236_s24, 4   ;;  %s1634_s12 = smov %s1143_s13 }
 0x7e8   : > { %s1635_s13 = smov %s1147_s14  ;;  %s1636_s14 = smov %s1270_s17 }
 0x7e9   : > { %s1637_s15 = smov %s1236_s24  ;;  %19 = sbr.rel (!%p17_p7) target bundleno = 6 (0x6), region = 82 }
 0x7f0   :  { %788 = vsyncpa [#allocation3], 1 }
 0x7f1   :  { %790 = vsyncpa [#allocation3 + $0x1], 1 }
 0x7f2   :  { %791 = vsyncpa [#allocation6], 1 }
 0x7f3   :  { %792 = vsyncpa [#allocation4], 1 }
 0x7f4   :  { %794 = vsyncpa [#allocation4 + $0x1], 1 }

</bundles_post_ra>
